<compile_context>
chip_gen: v5e
topology: v5e:2x2
jax: 0.10.0
libtpu: 0.0.40
codegen_flags: <defaults>
</compile_context>

<pallas_src>
import math
import functools

import jax
import jax.numpy as jnp
from jax.experimental import pallas as pl
from jax.experimental.pallas import tpu as pltpu


def _round_up(x, m):
    return ((x + m - 1) // m) * m


def _pad_to_shape(x, shape):
    pads = [(0, t - s) for s, t in zip(x.shape, shape)]
    if all(p == (0, 0) for p in pads):
        return x
    return jnp.pad(x, pads)


def _attention_kernel(*refs, inv_sqrt_d, masked):
    if masked:
        mask_ref, q_ref, k_ref, v_ref, o_ref = refs
    else:
        q_ref, k_ref, v_ref, o_ref = refs

    q = q_ref[...]   # (G, Qp, d)
    k = k_ref[...]   # (G, K,  d)
    v = v_ref[...]   # (G, K,  Vp)

    # scores = floor( Q @ K^T * (1/sqrt(d)) ) -- contraction over d, f32 accumulation,
    # compile-time reciprocal instead of a divide.
    s = jnp.einsum('bqd,bkd->bqk', q, k, preferred_element_type=jnp.float32)
    s = jnp.floor(s * jnp.float32(inv_sqrt_d))

    if masked:
        # mask_ref is (G, 1, K) (per-batch lens) or (G, Qp, K) (per-query lens), int32 0/1.
        valid = jnp.broadcast_to(mask_ref[...], s.shape)
        s = jnp.where(valid != 0, s, jnp.float32(-1e6))

    # Batched softmax over the whole (G, Qp, K) block; denominator reciprocal on the EUP.
    m = jnp.max(s, axis=-1, keepdims=True)
    e = jnp.exp(s - m)
    w = e * pl.reciprocal(jnp.sum(e, axis=-1, keepdims=True), approx=True)

    # dropout == identity (eval mode); PV matmul in V's (possibly bf16) dtype, f32 accum.
    o_ref[...] = jnp.einsum('bqk,bkv->bqv', w.astype(v.dtype), v,
                            preferred_element_type=jnp.float32).astype(o_ref.dtype)


def dot_product_attention(queries, keys, values, valid_lens=None, *, group_size=8):
    """Pallas TPU implementation of DotProductAttention.forward (eval mode).

    queries: (B, Q, d)   keys: (B, K, d)   values: (B, K, V)
    valid_lens: optional (B,) or (B, Q) int -- number of valid key positions.
    """
    B, Q, d = queries.shape
    _, K, _ = keys.shape
    _, _, V = values.shape
    out_dtype = queries.dtype

    masked = valid_lens is not None

    Qp = _round_up(Q, 8)      # sublane-aligned query rows
    Vp = _round_up(V, 128)    # lane-dense output / values (only the V side is padded)

    # Generation-aware VMEM budget (v5e/v6e: 128 MiB physical, v7x: 64 MiB).
    try:
        vmem_cap = int(pltpu.get_tpu_info().vmem_capacity_bytes)
    except Exception:
        vmem_cap = 64 << 20
    vmem_limit = min((vmem_cap * 3) // 4, 100 << 20)

    in_itemsize = queries.dtype.itemsize
    out_itemsize = jnp.dtype(out_dtype).itemsize

    mQ = 1
    mask = None
    if masked:
        vl = valid_lens.astype(jnp.int32)
        col = jnp.arange(K, dtype=jnp.int32)
        if vl.ndim == 1:
            mask = (col[None, None, :] < vl[:, None, None]).astype(jnp.int32)   # (B, 1, K)
            mQ = 1
        elif vl.ndim == 2:
            mask = (col[None, None, :] < vl[:, :, None]).astype(jnp.int32)      # (B, Q, K)
            mQ = Qp
        else:
            raise ValueError("valid_lens must be 1-D or 2-D")

    def _blk_bytes(g):
        blk = in_itemsize * g * (Qp * d + K * d + K * Vp)   # q, k, v blocks
        if masked:
            blk += 4 * g * mQ * K                            # mask block (int32)
        blk += out_itemsize * g * Qp * Vp                    # output block
        interm = 3 * 4 * g * Qp * K                          # scores / exp / weights (f32)
        return 2 * blk + interm                              # double-buffered I/O

    G = max(1, min(group_size, B))
    if B >= 2:
        G = min(G, max(1, B // 2))   # >= 2 'parallel' grid steps -> both v7x TensorCores
    while G > 1 and _blk_bytes(G) > vmem_limit:
        G -= 1
    Bp = _round_up(B, G)

    qp = _pad_to_shape(queries, (Bp, Qp, d))   # d left unpadded (block dim == full dim)
    kp = _pad_to_shape(keys, (Bp, K, d))
    vp = _pad_to_shape(values, (Bp, K, Vp))

    kernel = functools.partial(_attention_kernel,
                               inv_sqrt_d=1.0 / math.sqrt(d),
                               masked=masked)

    in_specs = [
        pl.BlockSpec((G, Qp, d), lambda g: (g, 0, 0)),
        pl.BlockSpec((G, K, d), lambda g: (g, 0, 0)),
        pl.BlockSpec((G, K, Vp), lambda g: (g, 0, 0)),
    ]
    operands = [qp, kp, vp]
    if masked:
        maskp = _pad_to_shape(mask, (Bp, mQ, K))
        in_specs = [pl.BlockSpec((G, mQ, K), lambda g: (g, 0, 0))] + in_specs
        operands = [maskp] + operands

    out = pl.pallas_call(
        kernel,
        out_shape=jax.ShapeDtypeStruct((Bp, Qp, Vp), out_dtype),
        grid=(Bp // G,),
        in_specs=in_specs,
        out_specs=pl.BlockSpec((G, Qp, Vp), lambda g: (g, 0, 0)),
        compiler_params=pltpu.CompilerParams(
            dimension_semantics=("parallel",),
            vmem_limit_bytes=vmem_limit),
    )(*operands)

    return out[:B, :Q, :V]


def _reference(queries, keys, values, valid_lens=None):
    """Plain-JAX reference mirroring the PyTorch forward."""
    d = queries.shape[-1]
    scores = jnp.floor(jnp.einsum('bqd,bkd->bqk', queries, keys) / math.sqrt(d))
    if valid_lens is not None:
        col = jnp.arange(keys.shape[1])
        if valid_lens.ndim == 1:
            m = col[None, None, :] < valid_lens[:, None, None]
        else:
            m = col[None, None, :] < valid_lens[:, :, None]
        scores = jnp.where(m, scores, -1e6)
    weights = jax.nn.softmax(scores, axis=-1)
    return jnp.einsum('bqk,bkv->bqv', weights, values)


if __name__ == "__main__":
    key = jax.random.PRNGKey(0)
    B, Q, K, d, V = 2, 8, 8, 32, 32

    kq, kk, kv = jax.random.split(key, 3)
    queries = jax.random.normal(kq, (B, Q, d), dtype=jnp.float32)
    keys = jax.random.normal(kk, (B, K, d), dtype=jnp.float32)
    values = jax.random.normal(kv, (B, K, V), dtype=jnp.float32)

    # Unmasked path.
    out = dot_product_attention(queries, keys, values, valid_lens=None)
    jax.block_until_ready(out)
    ref = _reference(queries, keys, values, None)
    assert out.shape == (B, Q, V)
    assert out.dtype == queries.dtype
    assert jnp.allclose(out, ref, atol=2e-3, rtol=2e-3)

    # Masked path (per-batch valid lens).
    valid_lens = jnp.array([3, 8], dtype=jnp.int32)
    out_m = dot_product_attention(queries, keys, values, valid_lens=valid_lens)
    jax.block_until_ready(out_m)
    ref_m = _reference(queries, keys, values, valid_lens)
    assert jnp.allclose(out_m, ref_m, atol=2e-3, rtol=2e-3)

    # Masked path (per-query valid lens).
    valid_lens2 = jnp.array([[2, 3, 4, 5, 6, 7, 8, 8],
                             [8, 7, 6, 5, 4, 3, 2, 1]], dtype=jnp.int32)
    out_m2 = dot_product_attention(queries, keys, values, valid_lens=valid_lens2)
    jax.block_until_ready(out_m2)
    ref_m2 = _reference(queries, keys, values, valid_lens2)
    assert jnp.allclose(out_m2, ref_m2, atol=2e-3, rtol=2e-3)

    print("KERNEL_OK")
</pallas_src>

<mosaic_0001>
module attributes {stable_mosaic.version = 11 : i64} {
  func.func @_attention_kernel(%arg0: i32, %arg1: memref<1x8x32xf32, #tpu.memory_space<vmem>>, %arg2: memref<1x8x32xf32, #tpu.memory_space<vmem>>, %arg3: memref<1x8x128xf32, #tpu.memory_space<vmem>>, %arg4: memref<1x8x128xf32, #tpu.memory_space<vmem>>) attributes {dimension_semantics = [#tpu.dimension_semantics<parallel>], iteration_bounds = array<i64: 2>, scalar_prefetch = 0 : i64, scratch_operands = 0 : i64, tpu.core_type = #tpu.core_type<tc>, window_params = [{transform_indices = @transform_0, window_bounds = array<i64: 1, 8, 32>}, {transform_indices = @transform_1, window_bounds = array<i64: 1, 8, 32>}, {transform_indices = @transform_2, window_bounds = array<i64: 1, 8, 128>}, {transform_indices = @transform_3, window_bounds = array<i64: 1, 8, 128>}]} {
    %c0 = arith.constant 0 : index
    %c0_0 = arith.constant 0 : index
    %c0_1 = arith.constant 0 : index
    %0 = vector.load %arg1[%c0, %c0_0, %c0_1] : memref<1x8x32xf32, #tpu.memory_space<vmem>>, vector<1x8x32xf32>
    %c0_2 = arith.constant 0 : index
    %c0_3 = arith.constant 0 : index
    %c0_4 = arith.constant 0 : index
    %1 = vector.load %arg2[%c0_2, %c0_3, %c0_4] : memref<1x8x32xf32, #tpu.memory_space<vmem>>, vector<1x8x32xf32>
    %c0_5 = arith.constant 0 : index
    %c0_6 = arith.constant 0 : index
    %c0_7 = arith.constant 0 : index
    %2 = vector.load %arg3[%c0_5, %c0_6, %c0_7] : memref<1x8x128xf32, #tpu.memory_space<vmem>>, vector<1x8x128xf32>
    "tpu.trace_start"() <{level = 10 : i32, message = "bqd,bkd->bqk"}> : () -> ()
    %cst = arith.constant dense<0.000000e+00> : vector<1x8x8xf32>
    %3 = tpu.matmul %0, %1, %cst {dimension_numbers = #tpu.dot_dimension_numbers<[2], [2], [1], [1], [0, 0, 0, 1, 1, 1], [0], [0]>} : vector<1x8x32xf32>, vector<1x8x32xf32>, vector<1x8x8xf32> -> vector<1x8x8xf32>
    "tpu.trace_stop"() : () -> ()
    %cst_8 = arith.constant 0.176776692 : f32
    %4 = vector.broadcast %cst_8 : f32 to vector<1x8x8xf32>
    %5 = arith.mulf %3, %4 : vector<1x8x8xf32>
    %6 = math.floor %5 : vector<1x8x8xf32>
    %cst_9 = arith.constant dense<0xFF800000> : vector<1x8xf32>
    %7 = vector.multi_reduction <maximumf>, %6, %cst_9 [2] : vector<1x8x8xf32> to vector<1x8xf32>
    %8 = vector.shape_cast %7 : vector<1x8xf32> to vector<1x8x1xf32>
    %9 = vector.broadcast %8 : vector<1x8x1xf32> to vector<1x8x8xf32>
    %10 = arith.subf %6, %9 : vector<1x8x8xf32>
    %11 = math.exp %10 : vector<1x8x8xf32>
    %cst_10 = arith.constant dense<0.000000e+00> : vector<1x8xf32>
    %12 = vector.multi_reduction <add>, %11, %cst_10 [2] : vector<1x8x8xf32> to vector<1x8xf32>
    %13 = vector.shape_cast %12 : vector<1x8xf32> to vector<1x8x1xf32>
    %14 = tpu.reciprocal %13 {approx = true} : vector<1x8x1xf32> -> vector<1x8x1xf32>
    %15 = vector.broadcast %14 : vector<1x8x1xf32> to vector<1x8x8xf32>
    %16 = arith.mulf %11, %15 : vector<1x8x8xf32>
    "tpu.trace_start"() <{level = 10 : i32, message = "bqk,bkv->bqv"}> : () -> ()
    %cst_11 = arith.constant dense<0.000000e+00> : vector<1x8x128xf32>
    %17 = tpu.matmul %16, %2, %cst_11 {dimension_numbers = #tpu.dot_dimension_numbers<[2], [1], [1], [2], [0, 0, 0, 1, 1, 2], [0], [0]>} : vector<1x8x8xf32>, vector<1x8x128xf32>, vector<1x8x128xf32> -> vector<1x8x128xf32>
    "tpu.trace_stop"() : () -> ()
    %c0_12 = arith.constant 0 : index
    %c0_13 = arith.constant 0 : index
    %c0_14 = arith.constant 0 : index
    %18 = vector.load %arg4[%c0_12, %c0_13, %c0_14] : memref<1x8x128xf32, #tpu.memory_space<vmem>>, vector<1x8x128xf32>
    tpu.vector_store %arg4[%c0_12, %c0_13, %c0_14], %17 {strides = array<i32>} : memref<1x8x128xf32, #tpu.memory_space<vmem>>, vector<1x8x128xf32>,
    return
  }
  func.func @transform_0(%arg0: i32) -> (i32, i32, i32) {
    %c0_i32 = arith.constant 0 : i32
    %c0_i32_0 = arith.constant 0 : i32
    %c0_i32_1 = arith.constant 0 : i32
    return %arg0, %c0_i32, %c0_i32_0 : i32, i32, i32
  }
  func.func @transform_1(%arg0: i32) -> (i32, i32, i32) {
    %c0_i32 = arith.constant 0 : i32
    %c0_i32_0 = arith.constant 0 : i32
    %c0_i32_1 = arith.constant 0 : i32
    return %arg0, %c0_i32, %c0_i32_0 : i32, i32, i32
  }
  func.func @transform_2(%arg0: i32) -> (i32, i32, i32) {
    %c0_i32 = arith.constant 0 : i32
    %c0_i32_0 = arith.constant 0 : i32
    %c0_i32_1 = arith.constant 0 : i32
    return %arg0, %c0_i32, %c0_i32_0 : i32, i32, i32
  }
  func.func @transform_3(%arg0: i32) -> (i32, i32, i32) {
    %c0_i32 = arith.constant 0 : i32
    %c0_i32_0 = arith.constant 0 : i32
    %c0_i32_1 = arith.constant 0 : i32
    return %arg0, %c0_i32, %c0_i32_0 : i32, i32, i32
  }
}

</mosaic_0001>

<bundles_post_ra>
// kernel: tpu_custom_call.1
= control target key start
LH: loop header
LB: loop body
LE: loop exit
PB: predicated region body
PF: predicated region fallthrough
CT: control target
= control target key end

     0   :  { %s912_s0 = inlined_call_operand.hbm [shape: f32[2,8,32], index: 0, kind: input, shape index: {}]   ;;  %s913_s1 = inlined_call_operand.hbm [shape: f32[2,8,32], index: 1, kind: input, shape index: {}]   ;;  %s914_s2 = inlined_call_operand.hbm [shape: f32[2,8,128], index: 2, kind: input, shape index: {}]   ;;  %s915_s3 = inlined_call_operand.hbm [shape: f32[2,8,128], index: 3, kind: output, shape index: {}]  }
   0x1   :  { %916 = sst [smem:[#allocation13_spill]] %s913_s1 }
   0x2   :  { %8 = vsyncpa [#allocation3], 0 }
   0x3   :  { %10 = vsyncpa [#allocation3 + $0x1], 0 }
   0x4   :  { %11 = vsyncpa [#allocation6], 0 }
   0x5   :  { %13 = vsyncpa [#allocation6 + $0x1], 0 }
   0x6   :  { %14 = vsyncpa [#allocation4], 0 }
   0x7   :  { %16 = vsyncpa [#allocation4 + $0x1], 0  ;;  %s723_s12 = smov 0   ;;  %s725_s13 = smov 0  }
   0x8   :  { %s727_s14 = smov 0   ;;  %s729_s15 = smov 0  }
   0x9 LB: > { %s744_s16 = sadd.s32 4294967295, %s701_s15   ;;  %s460_s17 = sadd.s32 4294967294, %s701_s15   ;;  %s701_s15 = sphi %s729_s15, %s928_s15   ;;  %s697_s14 = sphi %s727_s14, %s927_s14   ;;  %s693_s13 = sphi %s725_s13, %s926_s13   ;;  %s689_s12 = sphi %s723_s12, %s925_s12  }
   0xa   : > { %s748_s18 = sadd.s32 1, %s701_s15   ;;  %s29_s19 = sadd.s32 1, %s697_s14 }
   0xb   : > { %s26_s20 = ssub.s32 %s701_s15, %s748_s18  ;;  %p36_p0 = scmp.ne.s32.totalorder %s697_s14, %s693_s13 }
   0xc   : > { %p27_p1 = scmp.eq.s32.totalorder %s26_s20, 0  ;;  %p37_p2 = scmp.eq.s32.totalorder %s701_s15, 0 }
   0xd   : > { %p42_p3 = scmp.ne.s32.totalorder %s693_s13, %s689_s12  ;;  %p43_p4 = scmp.eq.s32.totalorder %s744_s16, 0 }
   0xe   : > { %s760_s21 = scalar_select %p27_p1, %s697_s14, %s29_s19  }
   0xf   : > { %p38_p5 = por %p37_p2, %p36_p0  ;;  %p762_p6 = por %p43_p4, %p42_p3 }
  0x10   : > { %917 = sst [smem:[#allocation12_spill]] %s760_s21  ;;  %p118_p7 = scmp.eq.s32.totalorder %s744_s16, 1 }
  0x11   : > { %p124_p8 = scmp.eq.s32.totalorder %s460_s17, 1  ;;  %p462_p9 = scmp.ge.s32.totalorder %s701_s15, 2 }
  0x12   : > { %p503_p10 = scmp.lt.s32.totalorder %s701_s15, 2  ;;  %p769_p11 = por %p118_p7, %p36_p0 }
  0x13   : > { %p773_p12 = por %p124_p8, %p42_p3  ;;  %s144_s25 = sand.u32 1, %s697_s14  }
  0x14   : > { %s779_s26 = sshll.u32 %s701_s15, 3  ;;  %s783_s27 = sshll.u32 %s144_s25, 3 }
  0x15   : > { %p785_p13 = pnand %p503_p10, %p38_p5  ;;  %s163_s29 = sand.u32 1, %s701_s15  }
  0x16   : > { %s922_s1 = sld [smem:[#allocation13_spill]]  ;;  %s167_s6 = scalar_lea.vmem [#allocation5], %s783_s27 }
  0x17   : > { %s175_s7 = sshll.u32 %s167_s6, 4  ;;  %p469_p0 = scmp.ge.s32.totalorder %s701_s15, 1  ;;  %s176_s7 = int_to_ptr.vmem [resolvable:$true] %s175_s7 }
  0x18   : > { %s796_s9 = scalar_lea.sflag [#allocation6], %s163_s29  ;;  %p545_p2 = pneg %p785_p13 }
  0x1c   : > { %s171_s5 = scalar_lea.hbm %s922_s1, %s779_s26  ;;  %s548_s20 = scalar_lea.hbm %s922_s1, 16 }
  0x1d   : > { %s173_s8 = sshll.u32 %s171_s5, 4  ;;  %s174_s8 = int_to_ptr.hbm [resolvable:$true] %s173_s8 }
  0x1e   : > { %s541_s10 = sshra.s32 %s174_s8, 4  ;;  %s542_s10 = int_to_ptr.hbm [resolvable:$true] %s541_s10 }
  0x1f   : > { %s543_s11 = scalar_lea.hbm %s542_s10, 8  ;;  %p549_p5 = scmp.lt.s32.totalorder %s542_s10, %s922_s1 }
  0x20   : > { %p544_p1 = scmp.ne.s32.totalorder %s542_s10, %s543_s11  ;;  %p550_p7 = scmp.lt.s32.totalorder %s548_s20, %s543_s11 }
  0x22   : > { %p546_p3 = pnand %p545_p2, %p544_p1  ;;  %p551_p8 = por %p550_p7, %p549_p5 }
  0x24   : > { %p547_p4 = pneg %p546_p3 }
  0x26   : > { %p552_p10 = pnand %p551_p8, %p547_p4 }
  0x28   : > { %555 = shalt.err (!%p552_p10)
}
  0x29   : > { %495 = dma.hbm_to_vmem [thread:$0]  (!%p785_p13), %s174_s8, 128, %s176_s7, %s796_s9  }
  0x2a   : > { %p199_p1 = scmp.lt.s32.totalorder %s701_s15, 3  ;;  %s152_s6 = scalar_lea.hbm %s912_s0, %s779_s26 }
  0x2b   : > { %s154_s11 = sshll.u32 %s152_s6, 4  ;;  %s148_s17 = scalar_lea.vmem [#allocation2], %s783_s27  ;;  %s155_s11 = int_to_ptr.hbm [resolvable:$true] %s154_s11 }
  0x2c   : > { %p819_p3 = pnand %p469_p0, %p199_p1  ;;  %s156_s19 = sshll.u32 %s148_s17, 4  ;;  %s157_s19 = int_to_ptr.vmem [resolvable:$true] %s156_s19 }
  0x2d   : > { %s145_s20 = scalar_lea.sflag [#allocation3], %s144_s25  ;;  %s571_s30 = sshra.s32 %s155_s11, 4  ;;  %s572_s30 = int_to_ptr.hbm [resolvable:$true] %s571_s30 }
  0x2e   : > { %s573_s7 = scalar_lea.hbm %s572_s30, 8  ;;  %s578_s29 = scalar_lea.hbm %s912_s0, 16 }
  0x2f   : > { %p574_p4 = scmp.ne.s32.totalorder %s572_s30, %s573_s7  ;;  %p579_p0 = scmp.lt.s32.totalorder %s572_s30, %s912_s0 }
  0x30   : > { %p580_p8 = scmp.lt.s32.totalorder %s578_s29, %s573_s7 }
  0x31   : > { %p576_p5 = pnand %p574_p4, %p545_p2 }
  0x32   : > { %p581_p10 = por %p580_p8, %p579_p0 }
  0x33   : > { %p577_p7 = pneg %p576_p5 }
  0x35   : > { %p582_p1 = pnand %p581_p10, %p577_p7 }
  0x37   : > { %585 = shalt.err (!%p582_p1)
}
  0x38   : > { %492 = dma.hbm_to_vmem [thread:$0]  (!%p785_p13), %s155_s11, 128, %s157_s19, %s145_s20  }
  0x39   : > { %s190_s1 = scalar_lea.hbm %s914_s2, %s779_s26  ;;  %s186_s8 = scalar_lea.vmem [#allocation7], %s783_s27 }
  0x3a   : > { %s194_s4 = sshll.u32 %s186_s8, 4  ;;  %s192_s21 = sshll.u32 %s190_s1, 4  ;;  %s195_s4 = int_to_ptr.vmem [resolvable:$true] %s194_s4  ;;  %s193_s21 = int_to_ptr.hbm [resolvable:$true] %s192_s21 }
  0x3b   : > { %s601_s30 = sshra.s32 %s193_s21, 4  ;;  %s608_s11 = scalar_lea.hbm %s914_s2, 16  ;;  %s602_s30 = int_to_ptr.hbm [resolvable:$true] %s601_s30 }
  0x3c   : > { %s603_s7 = scalar_lea.hbm %s602_s30, 8  ;;  %p609_p0 = scmp.lt.s32.totalorder %s602_s30, %s914_s2 }
  0x3d   : > { %p604_p4 = scmp.ne.s32.totalorder %s602_s30, %s603_s7  ;;  %p610_p8 = scmp.lt.s32.totalorder %s608_s11, %s603_s7 }
  0x3f   : > { %p606_p5 = pnand %p604_p4, %p545_p2  ;;  %p611_p10 = por %p610_p8, %p609_p0 }
  0x41   : > { %p607_p7 = pneg %p606_p5 }
  0x43   : > { %p612_p1 = pnand %p611_p10, %p607_p7 }
  0x45   : > { %615 = shalt.err (!%p612_p1)
}
  0x46   : > { %498 = dma.hbm_to_vmem [thread:$0]  (!%p785_p13), %s193_s21, 128, %s195_s4, %s796_s9  }
  0x47   : > { %203 = sbr.rel (%p819_p3) target bundleno = 597 (0x255), region = 32  ;;  %s857_s1 = sand.u32 (!%p819_p3), 1, %s693_s13  }
  0x48   : > { %s860_s26 = sshll.u32 (!%p819_p3), %s857_s1, 3  ;;  %s206_s27 = scalar_lea.sflag (!%p819_p3), [#allocation3], %s857_s1 }
  0x49   : > { %s209_s6 = scalar_lea.vmem (!%p819_p3), [#allocation2], %s860_s26 }
  0x4c   : > { %676 = dma.done.wait (%p762_p6), %s206_s27, 128  }
  0x4d   : > { %678 = vsyncadd (%p762_p6), %s206_s27, 4294967168  ;;  %s215_s21 = sand.u32 1, %s744_s16   ;;  %s219_s9 = scalar_lea.vmem [#allocation5], %s860_s26 }
  0x4e   : > { %s216_s28 = scalar_lea.sflag [#allocation6], %s215_s21 }
  0x4f   : > { %680 = dma.done.wait (%p762_p6), %s216_s28, 256  }
  0x50   : > { %682 = vsyncadd (%p762_p6), %s216_s28, 4294967040  ;;  %vm266_vm0 = vcmask 261120   ;;  %v264_v0 = vld [vmem:[%s219_s9] sm:$0xff]  ;;  %v263_v1 = vld [vmem:[%s209_s6] sm:$0xff]  ;;  %vm295_vm1 = vcmask 64512   ;;  %s229_s22 = scalar_lea.vmem [#allocation7], %s860_s26 }
  0x51   : > { %474 = vmatpush.xpose.msk.msra.mxu0 %vm266_vm0, %v264_v0  ;;  %v265_v11 = vld [vmem:[%s229_s22] sm:$0xff]  ;;  %s478_s10 = sshll.u32 %s744_s16, 3  ;;  %s262_s4 = scalar_lea.vmem [#allocation8], %s860_s26 }
  0x52   : > { %325 = vmatpush.msra.mxu1 %v265_v11  ;;  %s342_s8 = scalar_lea.hbm %s915_s3, %s478_s10  ;;  %s344_s30 = sshll.u32 %s262_s4, 4  ;;  %s345_s30 = int_to_ptr.vmem [resolvable:$true] %s344_s30 }
  0x53   : > { %s346_s7 = sshll.u32 %s342_s8, 4  ;;  %s332_s29 = scalar_lea.sflag [#allocation4], %s857_s1  ;;  %s347_s7 = int_to_ptr.hbm [resolvable:$true] %s346_s7 }
  0x54   : > { %475 = vmatmul.msk.f32.vlgmr.msra.gmra.mxu0 %vm266_vm0, %v263_v1  ;;  %s645_s5 = sshra.s32 %s347_s7, 4  ;;  %s651_s20 = scalar_lea.hbm %s915_s3, 16  ;;  %s646_s5 = int_to_ptr.hbm [resolvable:$true] %s645_s5 }
  0x55   : > { %s647_s11 = scalar_lea.hbm %s646_s5, 8  ;;  %p652_p3 = scmp.lt.s32.totalorder %s646_s5, %s915_s3 }
  0x56   : > { %p648_p6 = scmp.ne.s32.totalorder %s646_s5, %s647_s11  ;;  %p653_p4 = scmp.lt.s32.totalorder %s651_s20, %s647_s11 }
  0x58   : > { %p649_p13 = pnand %p648_p6, %p769_p11  ;;  %p654_p5 = por %p653_p4, %p652_p3 }
  0x5a   : > { %p650_p2 = pneg %p649_p13 }
  0x5c   : > { %p655_p7 = pnand %p654_p5, %p650_p2 }
  0xd1   : > { %v290_v2 = vpop.f32.mrf.mxu0 }
  0xd2   : > { %v293_v3 = vmul.f32 0.17677669, %v290_v2 }
  0xd4   : > { %v294_v4 = vfloor.f32 %v293_v3 }
  0xd6   : > { %v296_v5 = vsel %vm295_vm1, %v294_v4, -inf }
  0xd7   : > { %297 = vmax.xlane.f32.xlu0 %v296_v5 }
 0x14a   : > { %v298_v6 = vpop.xlane.xlu0 %297 }
 0x14b   : > { %v299_v7 = vsub.f32 %v294_v4, %v298_v6 }
 0x14d   : > { %v300_v8 = vmul.f32 1.442695, %v299_v7 }
 0x14f   : > { %537 = vpow2.f32 %v300_v8 }
 0x155   : > { %v538_v9 = vpop.eup %537 }
 0x156   : > { %v302_v10 = vsel %vm295_vm1, %v538_v9, 0.0 }
 0x157   : > { %303 = vadd.xlane.f32.xlu0 %v302_v10 }
 0x1ca   : > { %v304_v12 = vpop.xlane.xlu0 %303 }
 0x1cb   : > { %539 = vrcp.f32 %v304_v12 }
 0x1d1   : > { %v540_v13 = vpop.eup %539 }
 0x1d2   : > { %v306_v14 = vmul.f32 %v540_v13, %v538_v9 }
 0x1d4   : > { %476 = vmatmul.msk.f32.vlgmr.msra.gmra.mxu1 %vm295_vm1, %v306_v14 }
 0x251   : > { %v327_v15 = vpop.f32.mrf.mxu1 }
 0x252   : > { %330 = vst [vmem:[%s262_s4] sm:$0xff] %v327_v15 }
 0x253   : > { %658 = shalt.err (!%p655_p7)
}
 0x254   : > { %487 = dma.vmem_to_hbm [thread:$0]  (%p769_p11), %s345_s30, 128, %s347_s7, %s332_s29  }
 0x255 PF: > { %s358_s1 = sand.u32 1, %s689_s12   ;;  %p500_p0 = pnand %p462_p9, %p773_p12 }
 0x256   : > { %s359_s6 = scalar_lea.sflag [#allocation4], %s358_s1 }
 0x257   : > { %p501_p8 = pneg %p500_p0 }
 0x259   : > { %684 = dma.done.wait (%p501_p8), %s359_s6, 128  }
 0x25a   : > { %686 = vsyncadd (%p501_p8), %s359_s6, 4294967168  ;;  %s924_s21 = sld [smem:[#allocation12_spill]]  ;;  %p19_p10 = scmp.ge.s32.totalorder %s748_s18, 4  }
 0x25b   : > { %s925_s12 = smov %s693_s13  ;;  %s926_s13 = smov %s697_s14 }
 0x25c   : > { %s928_s15 = smov %s748_s18  ;;  %21 = sbr.rel (!%p19_p10) target bundleno = 9 (0x9), region = 101 }
 0x260   : > { %s927_s14 = smov %s924_s21 }
 0x261   :  { %365 = vsyncpa [#allocation3], 1 }
 0x262   :  { %367 = vsyncpa [#allocation3 + $0x1], 1 }
 0x263   :  { %368 = vsyncpa [#allocation6], 1 }
 0x264   :  { %370 = vsyncpa [#allocation6 + $0x1], 1 }
 0x265   :  { %371 = vsyncpa [#allocation4], 1 }
 0x266   :  { %373 = vsyncpa [#allocation4 + $0x1], 1 }

</bundles_post_ra>
